<compile_context>
chip_gen: v7x
topology: tpu7x:2x2x1
jax: 0.10.0
libtpu: 0.0.40
codegen_flags: <defaults>
</compile_context>

<pallas_src>
import functools

import jax
import jax.numpy as jnp
from jax.experimental import pallas as pl
from jax.experimental.pallas import tpu as pltpu


def _round_up(x: int, m: int) -> int:
    return ((x + m - 1) // m) * m


def _linear_bias_kernel_single_k(x_ref, w_ref, b_ref, o_ref):
    """Fast path: whole K fits in one tile -> no accumulator, direct store."""
    acc = jnp.dot(x_ref[...], w_ref[...], preferred_element_type=jnp.float32)
    o_ref[...] = (acc + b_ref[...].astype(jnp.float32)).astype(o_ref.dtype)


def _linear_bias_kernel_tiled_k(x_ref, w_ref, b_ref, o_ref, acc_ref):
    """General path: one (tm, tn) tile, K is the innermost grid axis."""
    k = pl.program_id(2)

    @pl.when(k == 0)
    def _init():
        acc_ref[...] = jnp.zeros_like(acc_ref)

    # MXU matmul with f32 accumulation.
    acc_ref[...] += jnp.dot(
        x_ref[...], w_ref[...], preferred_element_type=jnp.float32
    )

    @pl.when(k == pl.num_programs(2) - 1)
    def _finalize():
        o_ref[...] = (acc_ref[...] + b_ref[...].astype(jnp.float32)).astype(
            o_ref.dtype
        )


@functools.partial(jax.jit, static_argnames=("compute_dtype", "tm", "tn", "tk"))
def embedding_layer(x, w_pt, b, *, compute_dtype=None, tm=256, tn=256, tk=512):
    """Forward of EmbeddingLayer: y = x @ w_pt.T + b  (PyTorch nn.Linear).

    x:    [..., n_in]
    w_pt: [n_out, n_in]   (PyTorch weight layout)
    b:    [n_out]
    """
    n_out, n_in = w_pt.shape
    out_dtype = x.dtype

    # Flatten leading dims (nn.Linear acts on the last dim).
    lead_shape = x.shape[:-1]
    x2 = jnp.reshape(x, (-1, n_in))
    B = x2.shape[0]

    # Glue in plain JAX: transpose weight once so the kernel computes x @ W.
    w_t = jnp.transpose(w_pt)            # [n_in, n_out]
    b2 = jnp.reshape(b, (1, n_out))      # [1, n_out]

    if compute_dtype is not None:
        x2 = x2.astype(compute_dtype)
        w_t = w_t.astype(compute_dtype)

    # --- Tile sizes: sublane-aligned M, lane-aligned (multiple-of-128) K / N.
    tm = min(tm, _round_up(B, 8))        # multiple of 8
    tk = min(tk, _round_up(n_in, 128))   # multiple of 128
    tn = min(tn, _round_up(n_out, 128))  # multiple of 128

    # --- Zero-pad operands to tile multiples (lane-dense output, full MXU K).
    Mp = _round_up(B, tm)
    Kp = _round_up(n_in, tk)
    Np = _round_up(n_out, tn)

    x_p = jnp.pad(x2, ((0, Mp - B), (0, Kp - n_in)))
    w_p = jnp.pad(w_t, ((0, Kp - n_in), (0, Np - n_out)))
    b_p = jnp.pad(b2, ((0, 0), (0, Np - n_out)))

    if Kp == tk:
        # ---- Fast path: single K tile, no accumulator, 2-D grid. ----
        grid = (Mp // tm, Np // tn)
        out_p = pl.pallas_call(
            _linear_bias_kernel_single_k,
            out_shape=jax.ShapeDtypeStruct((Mp, Np), out_dtype),
            grid_spec=pltpu.PrefetchScalarGridSpec(
                num_scalar_prefetch=0,
                grid=grid,
                in_specs=[
                    pl.BlockSpec((tm, Kp), lambda i, j: (i, 0)),
                    pl.BlockSpec((Kp, tn), lambda i, j: (0, j)),
                    pl.BlockSpec((1, tn), lambda i, j: (0, j)),
                ],
                out_specs=pl.BlockSpec((tm, tn), lambda i, j: (i, j)),
            ),
            compiler_params=pltpu.CompilerParams(
                dimension_semantics=("parallel", "parallel"),
            ),
        )(x_p, w_p, b_p)
    else:
        # ---- General path: K-tiled reduction with f32 VMEM accumulator. ----
        grid = (Mp // tm, Np // tn, Kp // tk)
        out_p = pl.pallas_call(
            _linear_bias_kernel_tiled_k,
            out_shape=jax.ShapeDtypeStruct((Mp, Np), out_dtype),
            grid_spec=pltpu.PrefetchScalarGridSpec(
                num_scalar_prefetch=0,
                grid=grid,
                in_specs=[
                    pl.BlockSpec((tm, tk), lambda i, j, k: (i, k)),
                    pl.BlockSpec((tk, tn), lambda i, j, k: (k, j)),
                    # Bias depends only on the N axis -> one DMA per N tile.
                    pl.BlockSpec((1, tn), lambda i, j, k: (0, j)),
                ],
                out_specs=pl.BlockSpec((tm, tn), lambda i, j, k: (i, j)),
                scratch_shapes=[pltpu.VMEM((tm, tn), jnp.float32)],
            ),
            compiler_params=pltpu.CompilerParams(
                # M/N parallel (megacore / v7x 2-TC sharding), K reduction last.
                dimension_semantics=("parallel", "parallel", "arbitrary"),
            ),
        )(x_p, w_p, b_p)

    # Strip alignment padding and restore the leading dims.
    out = out_p[:B, :n_out]
    return jnp.reshape(out, lead_shape + (n_out,))


if __name__ == "__main__":
    key = jax.random.PRNGKey(0)
    kx, kw, kb = jax.random.split(key, 3)

    # Small shapes consistent with the module.
    B, n_in, n_out = 8, 32, 16

    x = jax.random.normal(kx, (B, n_in), dtype=jnp.float32)

    # nn.Linear default init: U(-1/sqrt(n_in), 1/sqrt(n_in)) for weight & bias.
    bound = 1.0 / jnp.sqrt(jnp.float32(n_in))
    w_pt = jax.random.uniform(kw, (n_out, n_in), jnp.float32, -bound, bound)
    b = jax.random.uniform(kb, (n_out,), jnp.float32, -bound, bound)

    # Pure-JAX reference of the PyTorch forward.
    ref = x @ w_pt.T + b

    # f32 fast path (single K tile).
    out = jax.block_until_ready(embedding_layer(x, w_pt, b))
    assert out.shape == (B, n_out)
    assert jnp.allclose(out, ref, atol=1e-5, rtol=1e-5)

    # bf16 compute path; accumulation & bias add remain f32.
    out_bf16 = jax.block_until_ready(
        embedding_layer(x, w_pt, b, compute_dtype=jnp.bfloat16)
    )
    assert out_bf16.shape == (B, n_out)
    assert jnp.allclose(out_bf16, ref, atol=1e-1, rtol=1e-1)

    # Exercise the K-tiled accumulator path (n_in > tk) to make sure it also
    # compiles and matches a JAX reference at a larger, alignment-unfriendly
    # shape.
    B2, n_in2, n_out2 = 96, 1536, 200
    kx2, kw2, kb2 = jax.random.split(jax.random.PRNGKey(1), 3)
    x2 = jax.random.normal(kx2, (B2, n_in2), dtype=jnp.float32)
    w2 = jax.random.normal(kw2, (n_out2, n_in2), dtype=jnp.float32) * 0.02
    b2 = jax.random.normal(kb2, (n_out2,), dtype=jnp.float32) * 0.02
    ref2 = x2 @ w2.T + b2
    out2 = jax.block_until_ready(embedding_layer(x2, w2, b2, tk=512))
    assert out2.shape == (B2, n_out2)
    assert jnp.allclose(out2, ref2, atol=2e-3, rtol=2e-3)

    print("KERNEL_OK")
</pallas_src>

<mosaic_0001>
module attributes {stable_mosaic.version = 11 : i64} {
  func.func @_linear_bias_kernel_single_k(%arg0: i32, %arg1: i32, %arg2: memref<8x128xf32, #tpu.memory_space<vmem>>, %arg3: memref<128x128xf32, #tpu.memory_space<vmem>>, %arg4: memref<1x128xf32, #tpu.memory_space<vmem>>, %arg5: memref<8x128xf32, #tpu.memory_space<vmem>>) attributes {dimension_semantics = [#tpu.dimension_semantics<parallel>, #tpu.dimension_semantics<parallel>], iteration_bounds = array<i64: 1, 1>, scalar_prefetch = 0 : i64, scratch_operands = 0 : i64, tpu.core_type = #tpu.core_type<tc>, window_params = [{transform_indices = @transform_0, window_bounds = array<i64: 8, 128>}, {transform_indices = @transform_1, window_bounds = array<i64: 128, 128>}, {transform_indices = @transform_2, window_bounds = array<i64: 1, 128>}, {transform_indices = @transform_3, window_bounds = array<i64: 8, 128>}]} {
    %c0 = arith.constant 0 : index
    %c0_0 = arith.constant 0 : index
    %0 = vector.load %arg2[%c0, %c0_0] : memref<8x128xf32, #tpu.memory_space<vmem>>, vector<8x128xf32>
    %c0_1 = arith.constant 0 : index
    %c0_2 = arith.constant 0 : index
    %1 = vector.load %arg3[%c0_1, %c0_2] : memref<128x128xf32, #tpu.memory_space<vmem>>, vector<128x128xf32>
    %cst = arith.constant dense<0.000000e+00> : vector<8x128xf32>
    %2 = tpu.matmul %0, %1, %cst {dimension_numbers = #tpu.dot_dimension_numbers<[1], [0], [0], [1], [0, 0, 1, 1], [], []>} : vector<8x128xf32>, vector<128x128xf32>, vector<8x128xf32> -> vector<8x128xf32>
    %c0_3 = arith.constant 0 : index
    %c0_4 = arith.constant 0 : index
    %3 = vector.load %arg4[%c0_3, %c0_4] : memref<1x128xf32, #tpu.memory_space<vmem>>, vector<1x128xf32>
    %4 = vector.broadcast %3 : vector<1x128xf32> to vector<8x128xf32>
    %5 = arith.addf %2, %4 : vector<8x128xf32>
    %c0_5 = arith.constant 0 : index
    %c0_6 = arith.constant 0 : index
    %6 = vector.load %arg5[%c0_5, %c0_6] : memref<8x128xf32, #tpu.memory_space<vmem>>, vector<8x128xf32>
    tpu.vector_store %arg5[%c0_5, %c0_6], %5 {strides = array<i32>} : memref<8x128xf32, #tpu.memory_space<vmem>>, vector<8x128xf32>,
    return
  }
  func.func @transform_0(%arg0: i32, %arg1: i32) -> (i32, i32) {
    %c0_i32 = arith.constant 0 : i32
    %c0_i32_0 = arith.constant 0 : i32
    return %arg0, %c0_i32 : i32, i32
  }
  func.func @transform_1(%arg0: i32, %arg1: i32) -> (i32, i32) {
    %c0_i32 = arith.constant 0 : i32
    %c0_i32_0 = arith.constant 0 : i32
    return %c0_i32, %arg1 : i32, i32
  }
  func.func @transform_2(%arg0: i32, %arg1: i32) -> (i32, i32) {
    %c0_i32 = arith.constant 0 : i32
    %c0_i32_0 = arith.constant 0 : i32
    return %c0_i32, %arg1 : i32, i32
  }
  func.func @transform_3(%arg0: i32, %arg1: i32) -> (i32, i32) {
    %c0_i32 = arith.constant 0 : i32
    return %arg0, %arg1 : i32, i32
  }
}

</mosaic_0001>

<bundles_post_ra>
// kernel: embedding_layer.1
= control target key start
LH: loop header
LB: loop body
LE: loop exit
PB: predicated region body
PF: predicated region fallthrough
CT: control target
= control target key end

     0   :  { %v229_v3 = vmov 0.0|0.0   ;;  %vm230_vm0 = vmmov 0   ;;  %v231_v6 = vmov 0.0   ;;  %s319_s0 = inlined_call_operand.vmem [shape: f32[8,128], index: 0, kind: input, shape index: {}]   ;;  %s320_s1 = inlined_call_operand.vmem [shape: f32[128,128], index: 1, kind: input, shape index: {}]   ;;  %s321_s2 = inlined_call_operand.vmem [shape: f32[1,128], index: 2, kind: input, shape index: {}]   ;;  %s322_s3 = inlined_call_operand.hbm [shape: f32[8,128], index: 3, kind: output, shape index: {}]  }
   0x1   :  { %v16_v0 = vld [vmem:[%s320_s1] sm:$0xff]  ;;  %v17_v1 = vld [vmem:[%s320_s1 + $0x8] sm:$0xff]  ;;  %v18_v2 = vld [vmem:[%s320_s1 + $0x10] sm:$0xff]  ;;  %177 = vmatprep.subr.bf16.mxu0 %v229_v3  ;;  %174 = vmatprep.mubr.msk.f32.mxu0 %vm230_vm0, %v231_v6 }
   0x2   :  { %v178_v4 = vpack.c.bf16 %v17_v1, %v16_v0  ;;  %v19_v5 = vld [vmem:[%s320_s1 + $0x18] sm:$0xff]  ;;  %v20_v8 = vld [vmem:[%s320_s1 + $0x20] sm:$0xff]  ;;  %v21_v9 = vld [vmem:[%s320_s1 + $0x28] sm:$0xff] }
   0x3   :  { %v181_v7 = vpack.c.bf16 %v19_v5, %v18_v2 }
   0x4   :  { %179 = vmatpush3.bf16.msra.mxu0 %v178_v4 }
   0x5   :  { %180 = vmatprep.subr.bf16.mxu0 %v229_v3 }
   0x6   :  { %8 = vsyncpa [#allocation3], 0  ;;  %v184_v10 = vpack.c.bf16 %v21_v9, %v20_v8  ;;  %v22_v11 = vld [vmem:[%s320_s1 + $0x30] sm:$0xff]  ;;  %v23_v12 = vld [vmem:[%s320_s1 + $0x38] sm:$0xff]  ;;  %s232_s21 = smov [#allocation2]  }
   0x7   :  { %v187_v13 = vpack.c.bf16 %v23_v12, %v22_v11  ;;  %v24_v14 = vld [vmem:[%s320_s1 + $0x40] sm:$0xff]  ;;  %v25_v15 = vld [vmem:[%s320_s1 + $0x48] sm:$0xff]  ;;  %v26_v17 = vld [vmem:[%s320_s1 + $0x50] sm:$0xff]  ;;  %s116_s22 = sshll.u32 %s232_s21, 4  ;;  %s117_s22 = int_to_ptr.vmem [resolvable:$true] %s116_s22 }
   0x8   :  { %182 = vmatpush3.bf16.msra.mxu0 %v181_v7  ;;  %v190_v16 = vpack.c.bf16 %v25_v15, %v24_v14  ;;  %v27_v18 = vld [vmem:[%s320_s1 + $0x58] sm:$0xff]  ;;  %v28_v20 = vld [vmem:[%s320_s1 + $0x60] sm:$0xff]  ;;  %v29_v21 = vld [vmem:[%s320_s1 + $0x68] sm:$0xff]  ;;  %p210_p1 = scmp.lt.s32.totalorder %s117_s22, %s117_s22 }
   0x9   :  { %183 = vmatprep.subr.bf16.mxu0 %v229_v3  ;;  %v193_v19 = vpack.c.bf16 %v27_v18, %v26_v17  ;;  %v196_v22 = vpack.c.bf16 %v29_v21, %v28_v20  ;;  %v30_v23 = vld [vmem:[%s320_s1 + $0x70] sm:$0xff]  ;;  %v31_v24 = vld [vmem:[%s320_s1 + $0x78] sm:$0xff]  ;;  %v15_v26 = vld [vmem:[%s319_s0] sm:$0xff]  ;;  %s205_s1 = scalar_lea.vmem %s117_s22, 128 }
   0xa   :  { %v199_v25 = vpack.c.bf16 %v31_v24, %v30_v23  ;;  %v124_v27 = vld [vmem:[%s321_s2] ss:$0 sm:$0xff]  ;;  %p206_p0 = scmp.ne.s32.totalorder %s117_s22, %s205_s1  ;;  %p211_p2 = scmp.lt.s32.totalorder %s205_s1, %s205_s1 }
   0xc   :  { %185 = vmatpush3.bf16.msra.mxu0 %v184_v10  ;;  %p212_p3 = por %p211_p2, %p210_p1 }
   0xd   :  { %186 = vmatprep.subr.bf16.mxu0 %v229_v3 }
   0xe   :  { %p213_p4 = pnand %p212_p3, %p206_p0 }
  0x10   :  { %188 = vmatpush3.bf16.msra.mxu0 %v187_v13 }
  0x11   :  { %189 = vmatprep.subr.bf16.mxu0 %v229_v3 }
  0x14   :  { %191 = vmatpush3.bf16.msra.mxu0 %v190_v16 }
  0x15   :  { %192 = vmatprep.subr.bf16.mxu0 %v229_v3 }
  0x18   :  { %194 = vmatpush3.bf16.msra.mxu0 %v193_v19 }
  0x19   :  { %195 = vmatprep.subr.bf16.mxu0 %v229_v3 }
  0x1c   :  { %197 = vmatpush3.bf16.msra.mxu0 %v196_v22 }
  0x1d   :  { %198 = vmatprep.subr.bf16.mxu0 %v229_v3 }
  0x20   :  { %200 = vmatpush3.bf16.msra.mxu0 %v199_v25 }
  0x23   :  { %175 = vmatmul.mubr.f32.vlgmr.msra.gmra.mrb[0].mxu0 %v15_v26 }
  0xf6   :  { %v105_v28 = vpop.f32.mrb[0].mxu0 }
  0xf7   :  { %v106_v29 = vadd.f32 %v124_v27, %v105_v28  ;;  %v176_v30 = vpop.f32.mrb[1].mxu0 }
  0xf9   :  { %109 = vst [vmem:[#allocation2] sm:$0xff] %v106_v29 }
  0xfa   :  { %216 = shalt.err (!%p213_p4)
}
  0xfb   :  { %s217_s24 = scalar_lea.hbm %s322_s3, 128 }
  0xfc   :  { %p218_p5 = scmp.ne.s32.totalorder %s322_s3, %s217_s24  ;;  %p221_p6 = scmp.lt.u32.totalorder %s217_s24, %s322_s3 }
  0xfe   :  { %p223_p7 = pnand %p221_p6, %p218_p5 }
 0x100   :  { %226 = shalt.err (!%p223_p7)
}
 0x101   :  { %119 = dma.vmem_to_hbm [thread:$0]  %s117_s22, 128, %s322_s3, [#allocation3]  }
 0x102   :  { %227 = dma.done.wait [#allocation3], 128  }
 0x103   :  { %228 = vsyncadd [#allocation3], 4294967168 }
 0x104   :  { %123 = vsyncpa [#allocation3], 1 }

</bundles_post_ra>
